<compile_context>
chip_gen: v7x
topology: tpu7x:2x2x1
jax: 0.10.0
libtpu: 0.0.40
codegen_flags: <defaults>
</compile_context>

<pallas_src>
import jax
import jax.numpy as jnp
from jax import lax
from jax.experimental import pallas as pl
from jax.experimental.pallas import tpu as pltpu

O = 4        # true output width of fc2
O_PAD = 8    # padded to a full sublane group so the output tile is (8, tm)


def _net_kernel(x_ref, w_ref, b_ref, out_ref):
    # x_ref:   (tm, D)      streamed batch tile
    # w_ref:   (O_PAD, D)   VMEM-resident fused weight (transposed layout)
    # b_ref:   (O_PAD, 1)   VMEM-resident fused bias
    # out_ref: (O_PAD, tm)  transposed output tile (batch on lanes -> dense vst)
    y = lax.dot_general(
        w_ref[...], x_ref[...],
        dimension_numbers=(((1,), (1,)), ((), ())),   # contract on D (A @ B^T)
        preferred_element_type=jnp.float32,
    )
    out_ref[...] = (y + b_ref[...]).astype(out_ref.dtype)


def fuse_params(w1, b1, w2, b2):
    """One-time (per parameter update) fusion of fc1/fc2.

    No activation between the layers, so:
        y = (x @ w1 + b1) @ w2 + b2 = x @ (w1 @ w2) + (b1 @ w2 + b2)
    Returns the fused weight transposed + sublane-padded, and the fused bias.
    """
    D = w1.shape[0]
    w_fused = w1 @ w2                 # (D, O)
    b_fused = b1 @ w2 + b2            # (O,)
    w_pad = jnp.zeros((O_PAD, D), jnp.float32).at[:O, :].set(w_fused.T)
    b_pad = jnp.zeros((O_PAD, 1), jnp.float32).at[:O, 0].set(b_fused)
    return w_pad, b_pad


def _pick_tm(B, D):
    """Batch-tile size from a VMEM budget that keeps v7x double-buffered."""
    budget = 16 << 20                          # bytes; safe under 32 MiB scoped
    per_row = 2 * 4 * (D + O_PAD)              # 2 buffers * f32 * (x row + out col)
    tm = (budget // per_row) // 128 * 128
    tm = max(128, min(2048, tm))
    if B <= tm:
        if B > 256:
            # split into >= 2 tiles so v7x's second TensorCore has work
            tm = pl.cdiv(pl.cdiv(B, 2), 128) * 128
        else:
            tm = B                             # single full-extent block (legal BlockSpec)
    return tm


def net_forward(x, w_pad, b_pad):
    """Forward pass of Net with pre-fused params.

    x:     (B, D) float32
    w_pad: (O_PAD, D), b_pad: (O_PAD, 1) from fuse_params
    returns (B, 4) float32
    """
    B, D = x.shape
    tm = _pick_tm(B, D)
    grid = (pl.cdiv(B, tm),)                   # ragged last block handled by Pallas

    out_t = pl.pallas_call(
        _net_kernel,
        out_shape=jax.ShapeDtypeStruct((O_PAD, B), jnp.float32),
        grid_spec=pl.GridSpec(
            grid=grid,
            in_specs=[
                pl.BlockSpec((tm, D), lambda i: (i, 0)),       # streamed x tiles
                pl.BlockSpec((O_PAD, D), lambda i: (0, 0)),    # resident fused W^T
                pl.BlockSpec((O_PAD, 1), lambda i: (0, 0)),    # resident fused bias
            ],
            out_specs=pl.BlockSpec((O_PAD, tm), lambda i: (0, i)),
        ),
        compiler_params=pltpu.CompilerParams(
            dimension_semantics=("parallel",),                 # v7x: 2 TCs share the grid
        ),
    )(x, w_pad, b_pad)

    # tiny (4, B) slice + transpose back to the module's (B, 4) layout
    return out_t[:O, :].T


def init_params(key, input_size, hidden=10, out=O):
    # Deterministic init mimicking nn.Linear's U(-1/sqrt(fan_in), 1/sqrt(fan_in)).
    k1, k2, k3, k4 = jax.random.split(key, 4)
    bound1 = 1.0 / jnp.sqrt(input_size)
    bound2 = 1.0 / jnp.sqrt(hidden)
    # Stored as (in, out) == torch weight transposed.
    w1 = jax.random.uniform(k1, (input_size, hidden), jnp.float32, -bound1, bound1)
    b1 = jax.random.uniform(k2, (hidden,), jnp.float32, -bound1, bound1)
    w2 = jax.random.uniform(k3, (hidden, out), jnp.float32, -bound2, bound2)
    b2 = jax.random.uniform(k4, (out,), jnp.float32, -bound2, bound2)
    return w1, b1, w2, b2


if __name__ == "__main__":
    key = jax.random.PRNGKey(0)
    batch, input_size = 8, 16
    kx, kp = jax.random.split(key)
    x = jax.random.normal(kx, (batch, input_size), jnp.float32)
    w1, b1, w2, b2 = init_params(kp, input_size)

    # One-time parameter fusion (hoisted out of the per-call path).
    w_pad, b_pad = fuse_params(w1, b1, w2, b2)

    out = net_forward(x, w_pad, b_pad)
    out = jax.block_until_ready(out)

    # Reference in plain JAX (same math as the PyTorch module, unfused).
    ref = (x @ w1 + b1) @ w2 + b2
    assert out.shape == (batch, O)
    # Layer fusion changes rounding order slightly -> modest tolerance.
    assert jnp.allclose(out, ref, atol=1e-4, rtol=1e-4)
    print("KERNEL_OK")
</pallas_src>

<mosaic_0001>
module attributes {stable_mosaic.version = 11 : i64} {
  func.func @_net_kernel(%arg0: i32, %arg1: memref<8x16xf32, #tpu.memory_space<vmem>>, %arg2: memref<8x16xf32, #tpu.memory_space<vmem>>, %arg3: memref<8x1xf32, #tpu.memory_space<vmem>>, %arg4: memref<8x8xf32, #tpu.memory_space<vmem>>) attributes {dimension_semantics = [#tpu.dimension_semantics<parallel>], iteration_bounds = array<i64: 1>, scalar_prefetch = 0 : i64, scratch_operands = 0 : i64, tpu.core_type = #tpu.core_type<tc>, window_params = [{transform_indices = @transform_0, window_bounds = array<i64: 8, 16>}, {pipeline_mode = #tpu.pipeline_mode<synchronous>, transform_indices = @transform_1, window_bounds = array<i64: 8, 16>}, {pipeline_mode = #tpu.pipeline_mode<synchronous>, transform_indices = @transform_2, window_bounds = array<i64: 8, 1>}, {transform_indices = @transform_3, window_bounds = array<i64: 8, 8>}]} {
    %c0 = arith.constant 0 : index
    %c0_0 = arith.constant 0 : index
    %0 = vector.load %arg2[%c0, %c0_0] : memref<8x16xf32, #tpu.memory_space<vmem>>, vector<8x16xf32>
    %c0_1 = arith.constant 0 : index
    %c0_2 = arith.constant 0 : index
    %1 = vector.load %arg1[%c0_1, %c0_2] : memref<8x16xf32, #tpu.memory_space<vmem>>, vector<8x16xf32>
    %cst = arith.constant dense<0.000000e+00> : vector<8x8xf32>
    %2 = tpu.matmul %0, %1, %cst {dimension_numbers = #tpu.dot_dimension_numbers<[1], [1], [0], [0], [0, 0, 1, 0], [], []>} : vector<8x16xf32>, vector<8x16xf32>, vector<8x8xf32> -> vector<8x8xf32>
    %c0_3 = arith.constant 0 : index
    %c0_4 = arith.constant 0 : index
    %3 = vector.load %arg3[%c0_3, %c0_4] : memref<8x1xf32, #tpu.memory_space<vmem>>, vector<8x1xf32>
    %4 = vector.broadcast %3 : vector<8x1xf32> to vector<8x8xf32>
    %5 = arith.addf %2, %4 : vector<8x8xf32>
    %c0_5 = arith.constant 0 : index
    %c0_6 = arith.constant 0 : index
    %6 = vector.load %arg4[%c0_5, %c0_6] : memref<8x8xf32, #tpu.memory_space<vmem>>, vector<8x8xf32>
    tpu.vector_store %arg4[%c0_5, %c0_6], %5 {strides = array<i32>} : memref<8x8xf32, #tpu.memory_space<vmem>>, vector<8x8xf32>,
    return
  }
  func.func @transform_0(%arg0: i32) -> (i32, i32) {
    %c0_i32 = arith.constant 0 : i32
    %c0_i32_0 = arith.constant 0 : i32
    return %arg0, %c0_i32 : i32, i32
  }
  func.func @transform_1(%arg0: i32) -> (i32, i32) {
    %c0_i32 = arith.constant 0 : i32
    %c0_i32_0 = arith.constant 0 : i32
    %c0_i32_1 = arith.constant 0 : i32
    return %c0_i32, %c0_i32_0 : i32, i32
  }
  func.func @transform_2(%arg0: i32) -> (i32, i32) {
    %c0_i32 = arith.constant 0 : i32
    %c0_i32_0 = arith.constant 0 : i32
    %c0_i32_1 = arith.constant 0 : i32
    return %c0_i32, %c0_i32_0 : i32, i32
  }
  func.func @transform_3(%arg0: i32) -> (i32, i32) {
    %c0_i32 = arith.constant 0 : i32
    %c0_i32_0 = arith.constant 0 : i32
    return %c0_i32, %arg0 : i32, i32
  }
}

</mosaic_0001>

<bundles_post_ra>
// kernel: tpu_custom_call.1
= control target key start
LH: loop header
LB: loop body
LE: loop exit
PB: predicated region body
PF: predicated region fallthrough
CT: control target
= control target key end

     0   :  { %8 = vsyncpa [#allocation3], 0  ;;  %s247_s0 = inlined_call_operand.vmem [shape: f32[8,16], index: 0, kind: input, shape index: {}]   ;;  %s248_s1 = inlined_call_operand.hbm [shape: f32[8,16], index: 1, kind: input, shape index: {}]   ;;  %s249_s2 = inlined_call_operand.vmem [shape: f32[8,1], index: 2, kind: input, shape index: {}]   ;;  %s250_s3 = inlined_call_operand.hbm [shape: f32[8,8], index: 3, kind: output, shape index: {}]  }
   0x1   :  { %9 = vsyncpa [#allocation4], 0  ;;  %s192_s12 = smov [#allocation2]   ;;  %s144_s16 = scalar_lea.hbm %s248_s1, 128 }
   0x2   :  { %s18_s13 = sshll.u32 %s192_s12, 4  ;;  %p145_p0 = scmp.ne.s32.totalorder %s248_s1, %s144_s16  ;;  %s19_s13 = int_to_ptr.vmem [resolvable:$true] %s18_s13 }
   0x3   :  { %p148_p1 = scmp.lt.u32.totalorder %s144_s16, %s248_s1 }
   0x5   :  { %p150_p2 = pnand %p148_p1, %p145_p0 }
   0x7   :  { %153 = shalt.err (!%p150_p2)
}
   0x8   :  { %s154_s21 = scalar_lea.vmem %s19_s13, 128  ;;  %p159_p4 = scmp.lt.s32.totalorder %s19_s13, %s19_s13 }
   0x9   :  { %p155_p3 = scmp.ne.s32.totalorder %s19_s13, %s154_s21  ;;  %p160_p5 = scmp.lt.s32.totalorder %s154_s21, %s154_s21 }
   0xb   :  { %p161_p6 = por %p160_p5, %p159_p4 }
   0xd   :  { %p162_p7 = pnand %p161_p6, %p155_p3 }
   0xf   :  { %165 = shalt.err (!%p162_p7)
}
  0x10   :  { %21 = dma.hbm_to_vmem [thread:$0]  %s248_s1, 128, %s19_s13, [#allocation3]  }
  0x11   :  { %188 = dma.done.wait [#allocation3], 128  }
  0x12   :  { %189 = vsyncadd [#allocation3], 4294967168  ;;  %v193_v0 = vmov 0.0   ;;  %vm194_vm0 = vmmov 0   ;;  %v195_v1 = vmov 0   ;;  %vm35_vm1 = vcmask 130048  }
  0x13   :  { %133 = vmatprep.subr.mxu0 %v193_v0  ;;  %135 = vmatprep.mubr.msk.f32.mxu0 %vm194_vm0, %v193_v0  ;;  %v28_v2 = vld [vmem:[%s247_s0] sm:$0xff]  ;;  %s196_s1 = smov [#allocation5]   ;;  %vm112_vm2 = vcmask 64512  }
  0x14   :  { %143 = vset.pattern.permute.xlu0 %v195_v1  ;;  %v29_v3 = vld [vmem:[%s249_s2] sm:$0xff]  ;;  %134 = vmatpush3.xpose.msk.msra.mxu0 %vm35_vm1, %v28_v2  ;;  %s120_s28 = sshll.u32 %s196_s1, 4  ;;  %s121_s28 = int_to_ptr.vmem [resolvable:$true] %s120_s28 }
  0x15   :  { %v27_v4 = vld [vmem:[#allocation2] sm:$0xff]  ;;  %32 = vperm.xlu0 %143, %v29_v3   ;;  %s166_s29 = scalar_lea.vmem %s121_s28, 128  ;;  %p171_p9 = scmp.lt.s32.totalorder %s121_s28, %s121_s28 }
  0x16   :  { %p167_p8 = scmp.ne.s32.totalorder %s121_s28, %s166_s29  ;;  %p172_p10 = scmp.lt.s32.totalorder %s166_s29, %s166_s29 }
  0x17   :  { %136 = vmatmul.mubr.msk.f32.vlgmr.msra.gmra.mrb[0].mxu0 %vm35_vm1, %v27_v4 }
  0x18   :  { %p173_p11 = por %p172_p10, %p171_p9 }
  0x1a   :  { %p174_p12 = pnand %p173_p11, %p167_p8 }
  0x94   :  { %v33_v5 = vpop.permute.xlu0 %32 }
  0xea   :  { %v108_v6 = vpop.f32.mrb[0].mxu0 }
  0xeb   :  { %v109_v7 = vadd.f32 %v108_v6, %v33_v5  ;;  %v137_v8 = vpop.f32.mrb[1].mxu0 }
  0xed   :  { %113 = vst.msk [vmem:[#allocation5] sm:$0xff] %vm112_vm2, %v109_v7 }
  0xee   :  { %177 = shalt.err (!%p174_p12)
}
  0xef   :  { %s178_s30 = scalar_lea.hbm %s250_s3, 128 }
  0xf0   :  { %p179_p13 = scmp.ne.s32.totalorder %s250_s3, %s178_s30  ;;  %p182_p0 = scmp.lt.u32.totalorder %s178_s30, %s250_s3 }
  0xf2   :  { %p184_p1 = pnand %p182_p0, %p179_p13 }
  0xf4   :  { %187 = shalt.err (!%p184_p1)
}
  0xf5   :  { %123 = dma.vmem_to_hbm [thread:$0]  %s121_s28, 128, %s250_s3, [#allocation4]  }
  0xf6   :  { %190 = dma.done.wait [#allocation4], 128  }
  0xf7   :  { %191 = vsyncadd [#allocation4], 4294967168 }
  0xf8   :  { %127 = vsyncpa [#allocation3], 1 }
  0xf9   :  { %128 = vsyncpa [#allocation4], 1 }

</bundles_post_ra>
